<compile_context>
chip_gen: v6e
topology: v6e:2x2x1
jax: 0.10.0
libtpu: 0.0.40
codegen_flags: <defaults>
</compile_context>

<pallas_src>
import math
import functools

import jax
import jax.numpy as jnp
from jax.experimental import pallas as pl
from jax.experimental.pallas import tpu as pltpu


def _round_up(x, m):
    return (x + m - 1) // m * m


# --------------------------------------------------------------------------- #
# Pallas kernel: one (row-tile, hidden-tile) step of
#   o = leaky_relu(x @ W1 + b1) @ W2 + b2        (dropout == identity)
# Hidden axis (grid axis 1) is a reduction: accumulate into acc_ref.
# --------------------------------------------------------------------------- #
def ffn_kernel(x_ref, w1_ref, b1_ref, w2_ref, b2_ref, o_ref, acc_ref, *, slope):
    k = pl.program_id(1)

    @pl.when(k == 0)
    def _():
        acc_ref[...] = jnp.zeros_like(acc_ref)

    # bf16 operands into the MXU, f32 accumulation.  Bias add / LeakyReLU ride in
    # VALU slack under the MXU-bound regime (left as-is on purpose).
    x = x_ref[...].astype(jnp.bfloat16)                               # (tm, Dp)
    h = jnp.dot(x, w1_ref[...], preferred_element_type=jnp.float32) + b1_ref[...]
    h = jnp.where(h >= 0, h, slope * h)                               # LeakyReLU(0.01)
    acc_ref[...] += jnp.dot(h.astype(jnp.bfloat16), w2_ref[...],
                            preferred_element_type=jnp.float32)

    @pl.when(k == pl.num_programs(1) - 1)
    def _():
        o_ref[...] = (acc_ref[...] + b2_ref[...]).astype(o_ref.dtype)


def feed_forward(x, w1, b1, w2, b2, *, slope=0.01,
                 row_tile_max=512, hidden_tile_max=1024):
    """Fused point-wise FFN.

    x  : (..., D) float32
    w1 : (D, H)   b1 : (H,)
    w2 : (H, D)   b2 : (D,)
    returns (..., D) float32
    """
    D = x.shape[-1]
    H = w1.shape[1]
    lead_shape = x.shape[:-1]
    N = int(math.prod(lead_shape)) if lead_shape else 1

    # ---- lane-dense padding of feature dims (skipped when already 128-aligned) ----- #
    Dp = _round_up(D, 128)
    Hp = _round_up(H, 128)

    # ---- hidden-dim streaming tile: caps VMEM independent of H --------------------- #
    hidden_tile_max = max(128, hidden_tile_max // 128 * 128)
    th = min(hidden_tile_max, Hp)
    Hp = _round_up(Hp, th)            # th must divide Hp (zero-padded hidden cols are inert)
    n_k = Hp // th

    # ---- row tiling over flattened leading dims (ragged last tile allowed) ---------- #
    row_tile_max = max(8, row_tile_max // 8 * 8)   # enforce (8,128) tiling constraint
    rows8 = _round_up(N, 8)
    tm = min(row_tile_max, rows8)
    if tm >= rows8 and rows8 >= 16:
        # Guarantee >= 2 row grid steps so v7x can shard the "parallel" axis on 2 TCs.
        tm = _round_up(pl.cdiv(rows8, 2), 8)
    n_rows = pl.cdiv(N, tm)

    x2 = x.reshape(N, D)
    x_p = x2 if Dp == D else jnp.pad(x2, ((0, 0), (0, Dp - D)))

    w1_p = (w1 if (Dp == D and Hp == H)
            else jnp.pad(w1, ((0, Dp - D), (0, Hp - H)))).astype(jnp.bfloat16)
    w2_p = (w2 if (Dp == D and Hp == H)
            else jnp.pad(w2, ((0, Hp - H), (0, Dp - D)))).astype(jnp.bfloat16)
    b1_p = b1.reshape(1, H) if Hp == H else jnp.pad(b1.reshape(1, H), ((0, 0), (0, Hp - H)))
    b2_p = b2.reshape(1, D) if Dp == D else jnp.pad(b2.reshape(1, D), ((0, 0), (0, Dp - D)))

    # ---- VMEM budget (double-buffered pipeline tiles + accumulator), with headroom -- #
    est = (2 * 2 * tm * Dp * 4                        # x + out tiles (f32, double-buffered)
           + 2 * (2 * Dp * th * 2 + (th + Dp) * 4)    # W1/W2 (bf16) + b1/b2 (f32), 2 buffers
           + tm * Dp * 4                              # f32 accumulator scratch
           + tm * th * 4)                             # live hidden activation
    vmem_limit = min(100 * 1024 * 1024, max(32 * 1024 * 1024, int(est * 1.5) + (4 << 20)))

    cost = pl.CostEstimate(
        flops=4 * N * D * H,                          # two matmuls, 2*N*D*H each
        transcendentals=0,
        bytes_accessed=2 * N * D * 4 + 2 * D * H * 2 + (D + H) * 4,
    )

    kernel = functools.partial(ffn_kernel, slope=slope)

    out_p = pl.pallas_call(
        kernel,
        out_shape=jax.ShapeDtypeStruct((N, Dp), jnp.float32),
        grid=(n_rows, n_k),
        in_specs=[
            pl.BlockSpec((tm, Dp), lambda i, k: (i, 0)),   # x row-tile
            pl.BlockSpec((Dp, th), lambda i, k: (0, k)),   # W1 column-block (streamed over k)
            pl.BlockSpec((1, th), lambda i, k: (0, k)),    # b1 block
            pl.BlockSpec((th, Dp), lambda i, k: (k, 0)),   # W2 row-block (streamed over k)
            pl.BlockSpec((1, Dp), lambda i, k: (0, 0)),    # b2 (resident)
        ],
        out_specs=pl.BlockSpec((tm, Dp), lambda i, k: (i, 0)),
        scratch_shapes=[pltpu.VMEM((tm, Dp), jnp.float32)],
        compiler_params=pltpu.CompilerParams(
            dimension_semantics=("parallel", "arbitrary"),  # rows independent, hidden = reduction
            vmem_limit_bytes=vmem_limit,
        ),
        cost_estimate=cost,
    )(x_p, w1_p, b1_p, w2_p, b2_p)

    out = out_p if Dp == D else out_p[:, :D]
    return out.reshape(*lead_shape, D)


# --------------------------------------------------------------------------- #
# Main: deterministic small example + pure-JAX reference check
# --------------------------------------------------------------------------- #
if __name__ == "__main__":
    d_model = 32
    hidden_dim = 64
    B, S = 2, 8

    key = jax.random.PRNGKey(0)
    k_x, k_w1, k_b1, k_w2, k_b2 = jax.random.split(key, 5)

    # nn.Linear-style init (scaled normal; exact distribution is irrelevant here)
    x = jax.random.normal(k_x, (B, S, d_model), jnp.float32)
    w1 = jax.random.normal(k_w1, (d_model, hidden_dim), jnp.float32) / math.sqrt(d_model)
    b1 = jax.random.normal(k_b1, (hidden_dim,), jnp.float32) * 0.01
    w2 = jax.random.normal(k_w2, (hidden_dim, d_model), jnp.float32) / math.sqrt(hidden_dim)
    b2 = jax.random.normal(k_b2, (d_model,), jnp.float32) * 0.01

    out = feed_forward(x, w1, b1, w2, b2)
    out = jax.block_until_ready(out)

    # Pure-JAX f32 reference (dropout is identity in eval mode).  Kernel uses bf16
    # MXU operands with f32 accumulation, so the tolerance reflects bf16 rounding.
    h_ref = jnp.dot(x, w1) + b1
    h_ref = jnp.where(h_ref >= 0, h_ref, 0.01 * h_ref)
    ref = jnp.dot(h_ref, w2) + b2

    assert out.shape == (B, S, d_model)
    assert jnp.allclose(out, ref, atol=1e-1, rtol=1e-1), "mismatch vs reference"
    # TODO(synk): nn.Dropout is treated as identity (inference); training-mode dropout
    # would need pltpu.prng_seed/prng_random_bits inside the kernel.
    print("KERNEL_OK")
</pallas_src>

<mosaic_0001>
module attributes {stable_mosaic.version = 11 : i64} {
  func.func @ffn_kernel(%arg0: i32, %arg1: i32, %arg2: memref<8x128xf32, #tpu.memory_space<vmem>>, %arg3: memref<128x128xbf16, #tpu.memory_space<vmem>>, %arg4: memref<1x128xf32, #tpu.memory_space<vmem>>, %arg5: memref<128x128xbf16, #tpu.memory_space<vmem>>, %arg6: memref<1x128xf32, #tpu.memory_space<vmem>>, %arg7: memref<8x128xf32, #tpu.memory_space<vmem>>, %arg8: memref<8x128xf32, #tpu.memory_space<vmem>>) attributes {dimension_semantics = [#tpu.dimension_semantics<parallel>, #tpu.dimension_semantics<arbitrary>], iteration_bounds = array<i64: 2, 1>, scalar_prefetch = 0 : i64, scratch_operands = 1 : i64, tpu.core_type = #tpu.core_type<tc>, window_params = [{transform_indices = @transform_0, window_bounds = array<i64: 8, 128>}, {transform_indices = @transform_1, window_bounds = array<i64: 128, 128>}, {transform_indices = @transform_2, window_bounds = array<i64: 1, 128>}, {transform_indices = @transform_3, window_bounds = array<i64: 128, 128>}, {pipeline_mode = #tpu.pipeline_mode<synchronous>, transform_indices = @transform_4, window_bounds = array<i64: 1, 128>}, {transform_indices = @transform_5, window_bounds = array<i64: 8, 128>}]} {
    %c0_i32 = arith.constant 0 : i32
    %0 = arith.cmpi eq, %arg1, %c0_i32 : i32
    %1 = arith.extui %0 : i1 to i32
    %c0_i32_0 = arith.constant 0 : i32
    %2 = arith.cmpi ne, %1, %c0_i32_0 : i32
    scf.if %2 {
      %cst_17 = arith.constant 0.000000e+00 : f32
      %24 = vector.broadcast %cst_17 : f32 to vector<8x128xf32>
      %c0_18 = arith.constant 0 : index
      %c0_19 = arith.constant 0 : index
      %25 = vector.load %arg8[%c0_18, %c0_19] : memref<8x128xf32, #tpu.memory_space<vmem>>, vector<8x128xf32>
      tpu.vector_store %arg8[%c0_18, %c0_19], %24 {strides = array<i32>} : memref<8x128xf32, #tpu.memory_space<vmem>>, vector<8x128xf32>,
    } else {
    }
    %c0 = arith.constant 0 : index
    %c0_1 = arith.constant 0 : index
    %3 = vector.load %arg2[%c0, %c0_1] : memref<8x128xf32, #tpu.memory_space<vmem>>, vector<8x128xf32>
    %4 = arith.truncf %3 : vector<8x128xf32> to vector<8x128xbf16>
    %c0_2 = arith.constant 0 : index
    %c0_3 = arith.constant 0 : index
    %5 = vector.load %arg3[%c0_2, %c0_3] : memref<128x128xbf16, #tpu.memory_space<vmem>>, vector<128x128xbf16>
    %cst = arith.constant dense<0.000000e+00> : vector<8x128xf32>
    %6 = tpu.matmul %4, %5, %cst {dimension_numbers = #tpu.dot_dimension_numbers<[1], [0], [0], [1], [0, 0, 1, 1], [], []>} : vector<8x128xbf16>, vector<128x128xbf16>, vector<8x128xf32> -> vector<8x128xf32>
    %c0_4 = arith.constant 0 : index
    %c0_5 = arith.constant 0 : index
    %7 = vector.load %arg4[%c0_4, %c0_5] : memref<1x128xf32, #tpu.memory_space<vmem>>, vector<1x128xf32>
    %8 = vector.broadcast %7 : vector<1x128xf32> to vector<8x128xf32>
    %9 = arith.addf %6, %8 : vector<8x128xf32>
    %cst_6 = arith.constant 0.000000e+00 : f32
    %10 = vector.broadcast %cst_6 : f32 to vector<8x128xf32>
    %11 = arith.cmpf oge, %9, %10 : vector<8x128xf32>
    %cst_7 = arith.constant 0.00999999977 : f32
    %12 = vector.broadcast %cst_7 : f32 to vector<8x128xf32>
    %13 = arith.mulf %12, %9 : vector<8x128xf32>
    %14 = arith.select %11, %9, %13 : vector<8x128xi1>, vector<8x128xf32>
    %c0_8 = arith.constant 0 : index
    %c0_9 = arith.constant 0 : index
    %15 = vector.load %arg8[%c0_8, %c0_9] : memref<8x128xf32, #tpu.memory_space<vmem>>, vector<8x128xf32>
    %16 = arith.truncf %14 : vector<8x128xf32> to vector<8x128xbf16>
    %c0_10 = arith.constant 0 : index
    %c0_11 = arith.constant 0 : index
    %17 = vector.load %arg5[%c0_10, %c0_11] : memref<128x128xbf16, #tpu.memory_space<vmem>>, vector<128x128xbf16>
    %cst_12 = arith.constant dense<0.000000e+00> : vector<8x128xf32>
    %18 = tpu.matmul %16, %17, %cst_12 {dimension_numbers = #tpu.dot_dimension_numbers<[1], [0], [0], [1], [0, 0, 1, 1], [], []>} : vector<8x128xbf16>, vector<128x128xbf16>, vector<8x128xf32> -> vector<8x128xf32>
    %19 = arith.addf %15, %18 : vector<8x128xf32>
    %c0_13 = arith.constant 0 : index
    %c0_14 = arith.constant 0 : index
    %20 = vector.load %arg8[%c0_13, %c0_14] : memref<8x128xf32, #tpu.memory_space<vmem>>, vector<8x128xf32>
    tpu.vector_store %arg8[%c0_13, %c0_14], %19 {strides = array<i32>} : memref<8x128xf32, #tpu.memory_space<vmem>>, vector<8x128xf32>,
    %c0_i32_15 = arith.constant 0 : i32
    %21 = arith.cmpi eq, %arg1, %c0_i32_15 : i32
    %22 = arith.extui %21 : i1 to i32
    %c0_i32_16 = arith.constant 0 : i32
    %23 = arith.cmpi ne, %22, %c0_i32_16 : i32
    scf.if %23 {
      %c0_17 = arith.constant 0 : index
      %c0_18 = arith.constant 0 : index
      %24 = vector.load %arg8[%c0_17, %c0_18] : memref<8x128xf32, #tpu.memory_space<vmem>>, vector<8x128xf32>
      %c0_19 = arith.constant 0 : index
      %c0_20 = arith.constant 0 : index
      %25 = vector.load %arg6[%c0_19, %c0_20] : memref<1x128xf32, #tpu.memory_space<vmem>>, vector<1x128xf32>
      %26 = vector.broadcast %25 : vector<1x128xf32> to vector<8x128xf32>
      %27 = arith.addf %24, %26 : vector<8x128xf32>
      %c0_21 = arith.constant 0 : index
      %c0_22 = arith.constant 0 : index
      %28 = vector.load %arg7[%c0_21, %c0_22] : memref<8x128xf32, #tpu.memory_space<vmem>>, vector<8x128xf32>
      tpu.vector_store %arg7[%c0_21, %c0_22], %27 {strides = array<i32>} : memref<8x128xf32, #tpu.memory_space<vmem>>, vector<8x128xf32>,
    } else {
    }
    return
  }
  func.func @transform_0(%arg0: i32, %arg1: i32) -> (i32, i32) {
    %c0_i32 = arith.constant 0 : i32
    %c0_i32_0 = arith.constant 0 : i32
    return %arg0, %c0_i32 : i32, i32
  }
  func.func @transform_1(%arg0: i32, %arg1: i32) -> (i32, i32) {
    %c0_i32 = arith.constant 0 : i32
    %c0_i32_0 = arith.constant 0 : i32
    return %c0_i32, %arg1 : i32, i32
  }
  func.func @transform_2(%arg0: i32, %arg1: i32) -> (i32, i32) {
    %c0_i32 = arith.constant 0 : i32
    %c0_i32_0 = arith.constant 0 : i32
    return %c0_i32, %arg1 : i32, i32
  }
  func.func @transform_3(%arg0: i32, %arg1: i32) -> (i32, i32) {
    %c0_i32 = arith.constant 0 : i32
    %c0_i32_0 = arith.constant 0 : i32
    return %arg1, %c0_i32 : i32, i32
  }
  func.func @transform_4(%arg0: i32, %arg1: i32) -> (i32, i32) {
    %c0_i32 = arith.constant 0 : i32
    %c0_i32_0 = arith.constant 0 : i32
    %c0_i32_1 = arith.constant 0 : i32
    return %c0_i32, %c0_i32_0 : i32, i32
  }
  func.func @transform_5(%arg0: i32, %arg1: i32) -> (i32, i32) {
    %c0_i32 = arith.constant 0 : i32
    %c0_i32_0 = arith.constant 0 : i32
    return %arg0, %c0_i32 : i32, i32
  }
}

</mosaic_0001>

<bundles_post_ra>
// kernel: tpu_custom_call.1
= control target key start
LH: loop header
LB: loop body
LE: loop exit
PB: predicated region body
PF: predicated region fallthrough
CT: control target
= control target key end

     0   :  { %s1281_s0 = inlined_call_operand.hbm [shape: f32[16,128], index: 0, kind: input, shape index: {}]   ;;  %s1282_s1 = inlined_call_operand.hbm [shape: bf16[128,128], index: 1, kind: input, shape index: {}]   ;;  %s1283_s2 = inlined_call_operand.vmem [shape: f32[1,128], index: 2, kind: input, shape index: {}]   ;;  %s1284_s3 = inlined_call_operand.hbm [shape: bf16[128,128], index: 3, kind: input, shape index: {}]   ;;  %s1285_s4 = inlined_call_operand.vmem [shape: f32[1,128], index: 4, kind: input, shape index: {}]   ;;  %s1286_s5 = inlined_call_operand.hbm [shape: f32[16,128], index: 5, kind: output, shape index: {}]  }
   0x1   :  { %1290 = sst [smem:[#allocation13_spill]] %s1282_s1 }
   0x2   :  { %10 = vsyncpa [#allocation4], 0 }
   0x3   :  { %12 = vsyncpa [#allocation4 + $0x1], 0 }
   0x4   :  { %13 = vsyncpa [#allocation7], 0 }
   0x5   :  { %14 = vsyncpa [#allocation5], 0 }
   0x6   :  { %16 = vsyncpa [#allocation5 + $0x1], 0  ;;  %s1082_s18 = smov 0   ;;  %s1084_s19 = smov 0  }
   0x7   :  { %s1086_s20 = smov 0   ;;  %s1088_s21 = smov 0  }
   0x8   :  { %s1090_s22 = smov 0   ;;  %s1092_s23 = smov 0  }
   0x9 LB: > { %s681_s24 = sadd.s32 4294967295, %s1042_s23   ;;  %s682_s25 = sadd.s32 4294967294, %s1042_s23   ;;  %s1042_s23 = sphi %s1092_s23, %s22_s23   ;;  %s1038_s22 = sphi %s1090_s22, %s1308_s22   ;;  %s1034_s21 = sphi %s1088_s21, %s1307_s21   ;;  %s1030_s20 = sphi %s1086_s20, %s1306_s20   ;;  %s1026_s19 = sphi %s1084_s19, %s1305_s19   ;;  %s1022_s18 = sphi %s1082_s18, %s1304_s18  }
   0xa   : > { %p54_p0 = scmp.ne.s32.totalorder %s1026_s19, %s1022_s18  ;;  %p1116_p1 = scmp.eq.s32.totalorder %s681_s24, 0 }
   0xb   : > { %p1120_p2 = scmp.eq.s32.totalorder %s681_s24, 1  ;;  %p183_p3 = scmp.eq.s32.totalorder %s682_s25, 1 }
   0xc   : > { %s1291_s26 = scalar_select %p1116_p1, 1, 0 }
   0xd   : > { %p1126_p4 = por %p1116_p1, %p54_p0  ;;  %p683_p5 = scmp.ge.s32.totalorder %s1042_s23, 1 }
   0xe   : > { %p1131_p6 = por %p183_p3, %p54_p0  ;;  %p190_p7 = scmp.lt.s32.totalorder %s1042_s23, 3 }
   0xf   : > { %s1293_s28 = scalar_select %p1126_p4, 1, 0 }
  0x10   : > { %s1294_s29 = scalar_select %p1131_p6, 1, 0 }
  0x11   : > { %p1136_p8 = pnand %p683_p5, %p190_p7  ;;  %s1044_s6 = smov [#allocation6]  }
  0x12   : > { %s204_s7 = sshll.u32 %s1044_s6, 4  ;;  %s1045_s9 = smov [#allocation8]   ;;  %s205_s7 = int_to_ptr.vmem [resolvable:$true] %s204_s7 }
  0x13   : > { %p787_p9 = pneg %p1136_p8  ;;  %s226_s10 = sshll.u32 %s1045_s9, 4  ;;  %s227_s10 = int_to_ptr.vmem [resolvable:$true] %s226_s10 }
  0x14   : > { %s889_s11 = scalar_lea.vmem %s205_s7, 1024  ;;  %p897_p5 = scmp.lt.s32.totalorder %s205_s7, %s205_s7 }
  0x15   : > { %p1145_p11 = pnand %p787_p9, %p1116_p1  ;;  %p890_p13 = scmp.ne.s32.totalorder %s205_s7, %s889_s11 }
  0x16   : > { %p898_p7 = scmp.lt.s32.totalorder %s889_s11, %s889_s11 }
  0x17   : > { %p880_p12 = pneg %p1145_p11 }
  0x18   : > { %p899_p10 = por %p898_p7, %p897_p5 }
  0x19   : > { %p892_p0 = pnand %p890_p13, %p880_p12 }
  0x1b   : > { %p893_p3 = pneg %p892_p0 }
  0x1d   : > { %p900_p9 = pnand %p899_p10, %p893_p3 }
  0x1f   : > { %903 = shalt.err (!%p900_p9)
}
  0x20   : > { %s1046_s12 = smov 64   ;;  %s1047_s13 = smov 4  }
  0x21   : > { %s1297_s1 = sld [smem:[#allocation13_spill]]  ;;  %s915_s16 = scalar_lea.vmem %s227_s10, 1024 }
  0x22   : > { %p916_p6 = scmp.ne.s32.totalorder %s227_s10, %s915_s16  ;;  %p923_p1 = scmp.lt.s32.totalorder %s227_s10, %s227_s10 }
  0x23   : > { %p924_p4 = scmp.lt.s32.totalorder %s915_s16, %s915_s16 }
  0x24   : > { %p918_p13 = pnand %p916_p6, %p880_p12 }
  0x25   : > { %p925_p5 = por %p924_p4, %p923_p1 }
  0x26   : > { %p919_p0 = pneg %p918_p13 }
  0x27   : > { %790 = dma.hbm_to_vmem [thread:$0]  (!%p1145_p11), %s1297_s1, 1024, %s205_s7, [#allocation7], %s1046_s12, %s1046_s12, %s1047_s13  }
  0x28   : > { %p926_p10 = pnand %p925_p5, %p919_p0 }
  0x2a   : > { %929 = shalt.err (!%p926_p10)
}
  0x2b   : > { %793 = dma.hbm_to_vmem [thread:$0]  (!%p1145_p11), %s1284_s3, 1024, %s227_s10, [#allocation7], %s1046_s12, %s1046_s12, %s1047_s13  }
  0x2c   : > { %s34_s25 = sadd.s32 1, %s1038_s22  ;;  %s41_s6 = sadd.s32 1, %s1030_s20 }
  0x2d   : > { %p36_p1 = scmp.ge.s32.totalorder %s34_s25, 2  ;;  %p48_p4 = scmp.ne.s32.totalorder %s1030_s20, %s1026_s19 }
  0x2e   : > { %p49_p6 = scmp.eq.s32.totalorder %s1042_s23, 0  ;;  %p804_p12 = scmp.lt.s32.totalorder %s1042_s23, 2 }
  0x2f   : > { %s1310_s25 = smov (%p36_p1, %s34_s25), 0  ;;  %p1177_p7 = por %p1120_p2, %p48_p4 }
  0x30   : > { %p50_p3 = por %p49_p6, %p48_p4  ;;  %s38_s8 = ssub.s32 %s1038_s22, %s1310_s25 }
  0x31   : > { %s243_s9 = sand.u32 1, %s1030_s20   ;;  %p39_p9 = scmp.eq.s32.totalorder %s38_s8, 0 }
  0x32   : > { %s688_s10 = sshll.u32 %s243_s9, 3  ;;  %s689_s11 = sshll.u32 %s1038_s22, 7 }
  0x33   : > { %s1186_s12 = scalar_select %p39_p9, %s1030_s20, %s41_s6  }
  0x34   : > { %s252_s15 = scalar_lea.hbm %s1281_s0, %s689_s11  ;;  %s247_s16 = scalar_lea.vmem [#allocation3], %s688_s10 }
  0x35   : > { %s254_s17 = sshll.u32 %s247_s16, 4  ;;  %p1193_p11 = pnand %p804_p12, %p50_p3  ;;  %s255_s17 = int_to_ptr.vmem [resolvable:$true] %s254_s17 }
  0x36   : > { %s244_s24 = scalar_lea.sflag [#allocation4], %s243_s9  ;;  %s943_s8 = scalar_lea.vmem %s255_s17, 128 }
  0x37   : > { %p932_p2 = pneg %p1193_p11  ;;  %p944_p13 = scmp.ne.s32.totalorder %s255_s17, %s943_s8 }
  0x38   : > { %s1048_s6 = smov [#allocation3]  }
  0x39   : > { %p946_p0 = pnand %p944_p13, %p932_p2  ;;  %s948_s1 = sshll.u32 %s1048_s6, 4  ;;  %s949_s1 = int_to_ptr.vmem [resolvable:$false] %s948_s1 }
  0x3a   : > { %s950_s11 = scalar_lea.vmem %s949_s1, 256  ;;  %p951_p10 = scmp.lt.s32.totalorder %s255_s17, %s949_s1 }
  0x3b   : > { %p947_p5 = pneg %p946_p0  ;;  %p952_p1 = scmp.lt.s32.totalorder %s950_s11, %s943_s8 }
  0x3d   : > { %p953_p4 = por %p952_p1, %p951_p10 }
  0x3f   : > { %p954_p6 = pnand %p953_p4, %p947_p5 }
  0x41   : > { %957 = shalt.err (!%p954_p6)
}
  0x42   : > { %797 = dma.hbm_to_vmem [thread:$0]  (!%p1193_p11), %s252_s15, 128, %s255_s17, %s244_s24  }
  0x43   : > { %263 = sbr.rel (%p1136_p8) target bundleno = 519 (0x207), region = 40  ;;  %s1204_s9 = sand.u32 (!%p1136_p8), 1, %s1026_s19  }
  0x44   : > { %s691_s10 = sshll.u32 (!%p1136_p8), %s1204_s9, 3  ;;  %s266_s13 = scalar_lea.sflag (!%p1136_p8), [#allocation4], %s1204_s9 }
  0x45   : > { %s1210_s1 = scalar_lea.vmem (!%p1136_p8), [#allocation3], %s691_s10  ;;  %p1300_p12 = scmp.ne.s32.totalorder (!%p1136_p8), %s1293_s28, 0 }
  0x48   : > { %1009 = dma.done.wait (%p1300_p12), %s266_s13, 128  }
  0x49   : > { %1011 = vsyncadd (%p1300_p12), %s266_s13, 4294967168  ;;  %p1301_p3 = scmp.ne.s32.totalorder %s1291_s26, 0 }
  0x4b   : > { %1013 = dma.done.wait (%p1301_p3), [#allocation7], 2048  }
  0x4c   : > { %1015 = vsyncadd (%p1301_p3), [#allocation7], 4294965248  ;;  %v1049_v0 = vmov 0.0   ;;  %vm1050_vm0 = vmmov 0   ;;  %v862_v1 = vld [vmem:[#allocation6 + $0x38] sm:$0xff]   ;;  %v863_v2 = vld [vmem:[#allocation6 + $0x30] sm:$0xff]  }
  0x4d   : > { %735 = vmatprep.subr.bf16.mxu0 %v1049_v0  ;;  %751 = vmatprep.mubr.msk.bf16.mxu0 %vm1050_vm0, %v1049_v0  ;;  %v864_v3 = vld [vmem:[#allocation6 + $0x28] sm:$0xff]   ;;  %v870_v4 = vld [vmem:[#allocation8 + $0x38] sm:$0xff]   ;;  %v865_v5 = vld [vmem:[#allocation6 + $0x20] sm:$0xff]   ;;  %s714_s15 = sshll.u32 %s1034_s21, 7  ;;  %s306_s16 = scalar_lea.vmem [#allocation9], %s691_s10 }
  0x4e   : > { %755 = vmatprep.subr.bf16.mxu1 %v1049_v0  ;;  %771 = vmatprep.mubr.msk.bf16.mxu1 %vm1050_vm0, %v1049_v0  ;;  %v871_v6 = vld [vmem:[#allocation8 + $0x30] sm:$0xff]   ;;  %v866_v7 = vld [vmem:[#allocation6 + $0x18] sm:$0xff]   ;;  %v872_v8 = vld [vmem:[#allocation8 + $0x28] sm:$0xff]   ;;  %s568_s17 = sshll.u32 %s306_s16, 4  ;;  %s1233_s8 = scalar_lea.hbm %s1286_s5, %s714_s15  ;;  %s1235_s17 = int_to_ptr.vmem [resolvable:$true] %s568_s17 }
  0x4f   : > { %736 = vmatpush3.bf16.msra.mxu0 %v862_v1  ;;  %756 = vmatpush3.bf16.msra.mxu1 %v870_v4  ;;  %v867_v9 = vld [vmem:[#allocation6 + $0x10] sm:$0xff]   ;;  %v873_v10 = vld [vmem:[#allocation8 + $0x20] sm:$0xff]   ;;  %v868_v11 = vld [vmem:[#allocation6 + $0x8] sm:$0xff]   ;;  %s555_s6 = scalar_lea.sflag [#allocation5], %s1204_s9  ;;  %s958_s21 = scalar_lea.vmem %s1235_s17, 128 }
  0x50   : > { %737 = vmatprep.subr.bf16.mxu0 %v1049_v0  ;;  %757 = vmatprep.subr.bf16.mxu1 %v1049_v0  ;;  %v874_v12 = vld [vmem:[#allocation8 + $0x18] sm:$0xff]   ;;  %v869_v13 = vld [vmem:[#allocation6] sm:$0xff]   ;;  %v875_v15 = vld [vmem:[#allocation8 + $0x10] sm:$0xff]   ;;  %p959_p8 = scmp.ne.s32.totalorder %s1235_s17, %s958_s21  ;;  %s1051_s11 = smov [#allocation9]  }
  0x51   : > { %v317_v14 = vld [vmem:[%s1210_s1] sm:$0xff]  ;;  %v876_v17 = vld [vmem:[#allocation8 + $0x8] sm:$0xff]   ;;  %v877_v18 = vld [vmem:[#allocation8] sm:$0xff]   ;;  %s962_s10 = sshll.u32 %s1051_s11, 4  ;;  %s963_s10 = int_to_ptr.vmem [resolvable:$false] %s962_s10 }
  0x52   : > { %v318_v16 = vpack.c.bf16 %v317_v14, %v317_v14  ;;  %v695_v19 = vld [vmem:[%s1283_s2] ss:$0 sm:$0xff]  ;;  %p960_p9 = pnand %p959_p8, %p1177_p7  ;;  %s964_s13 = scalar_lea.vmem %s963_s10, 256 }
  0x53   : > { %738 = vmatpush3.bf16.msra.mxu0 %v863_v2  ;;  %758 = vmatpush3.bf16.msra.mxu1 %v871_v6  ;;  %v712_v28 = vld [vmem:[%s1285_s4] ss:$0 sm:$0xff]  ;;  %p965_p2 = scmp.lt.s32.totalorder %s1235_s17, %s963_s10  ;;  %p966_p13 = scmp.lt.s32.totalorder %s964_s13, %s958_s21 }
  0x54   : > { %739 = vmatprep.subr.bf16.mxu0 %v1049_v0  ;;  %759 = vmatprep.subr.bf16.mxu1 %v1049_v0  ;;  %p961_p11 = pneg %p960_p9 }
  0x55   : > { %p967_p0 = por %p966_p13, %p965_p2 }
  0x57   : > { %740 = vmatpush3.bf16.msra.mxu0 %v864_v3  ;;  %760 = vmatpush3.bf16.msra.mxu1 %v872_v8  ;;  %p968_p5 = pnand %p967_p0, %p961_p11 }
  0x58   : > { %741 = vmatprep.subr.bf16.mxu0 %v1049_v0  ;;  %761 = vmatprep.subr.bf16.mxu1 %v1049_v0 }
  0x5b   : > { %742 = vmatpush3.bf16.msra.mxu0 %v865_v5  ;;  %762 = vmatpush3.bf16.msra.mxu1 %v873_v10 }
  0x5c   : > { %743 = vmatprep.subr.bf16.mxu0 %v1049_v0  ;;  %763 = vmatprep.subr.bf16.mxu1 %v1049_v0 }
  0x5f   : > { %744 = vmatpush3.bf16.msra.mxu0 %v866_v7  ;;  %764 = vmatpush3.bf16.msra.mxu1 %v874_v12 }
  0x60   : > { %745 = vmatprep.subr.bf16.mxu0 %v1049_v0  ;;  %765 = vmatprep.subr.bf16.mxu1 %v1049_v0 }
  0x63   : > { %746 = vmatpush3.bf16.msra.mxu0 %v867_v9  ;;  %766 = vmatpush3.bf16.msra.mxu1 %v875_v15 }
  0x64   : > { %747 = vmatprep.subr.bf16.mxu0 %v1049_v0  ;;  %767 = vmatprep.subr.bf16.mxu1 %v1049_v0 }
  0x67   : > { %748 = vmatpush3.bf16.msra.mxu0 %v868_v11  ;;  %768 = vmatpush3.bf16.msra.mxu1 %v876_v17 }
  0x68   : > { %749 = vmatprep.subr.bf16.mxu0 %v1049_v0  ;;  %769 = vmatprep.subr.bf16.mxu1 %v1049_v0 }
  0x6b   : > { %750 = vmatpush3.bf16.msra.mxu0 %v869_v13  ;;  %770 = vmatpush3.bf16.msra.mxu1 %v877_v18 }
  0x6e   : > { %752 = vmatmul.mubr.bf16.vlgmr.msra.gmra.mxu0 %v318_v16 }
 0x12e   : > { %v424_v20 = vpop.f32.mrf.mxu0 }
 0x12f   : > { %v425_v21 = vadd.f32 %v695_v19, %v424_v20 }
 0x130   : > { %v753_v22 = vpop.f32.mrf.mxu0 }
 0x131   : > { %vm430_vm1 = vcmp.ge.f32.partialorder %v425_v21, 0.0  ;;  %v431_v23 = vmul.f32 0.01, %v425_v21 }
 0x132   : > { %v427_v24 = vpop.f32.mrf.mxu0 }
 0x133   : > { %v432_v25 = vsel %vm430_vm1, %v425_v21, %v431_v23 }
 0x134   : > { %v754_v26 = vpop.f32.mrf.mxu0  ;;  %v434_v27 = vpack.c.bf16 %v432_v25, %v432_v25 }
 0x136   : > { %772 = vmatmul.mubr.bf16.vlgmr.msra.gmra.mxu1 %v434_v27 }
 0x1f6   : > { %v533_v29 = vpop.f32.mrf.mxu1 }
 0x1f7   : > { %v552_v30 = vadd.f32 %v712_v28, %v533_v29 }
 0x1f8   : > { %v773_v31 = vpop.f32.mrf.mxu1 }
 0x1f9   : > { %553 = vst [vmem:[%s306_s16] sm:$0xff] %v552_v30 }
 0x1fa   : > { %v536_v32 = vpop.f32.mrf.mxu1 }
 0x1fb   : > { %971 = shalt.err (!%p968_p5)
}
 0x1fc   : > { %s972_s1 = scalar_lea.hbm %s1233_s8, 128  ;;  %s976_s28 = scalar_lea.hbm %s1286_s5, 256 }
 0x1fd   : > { %p973_p10 = scmp.ne.s32.totalorder %s1233_s8, %s972_s1  ;;  %p977_p6 = scmp.lt.s32.totalorder %s1233_s8, %s1286_s5 }
 0x1fe   : > { %p978_p12 = scmp.lt.s32.totalorder %s976_s28, %s972_s1 }
 0x1ff   : > { %p974_p1 = pnand %p973_p10, %p1177_p7 }
 0x200   : > { %p979_p3 = por %p978_p12, %p977_p6 }
 0x201   : > { %p975_p4 = pneg %p974_p1 }
 0x203   : > { %p980_p8 = pnand %p979_p3, %p975_p4 }
 0x205   : > { %983 = shalt.err (!%p980_p8)
}
 0x206   : > { %785 = dma.vmem_to_hbm [thread:$0]  (%p1177_p7), %s1235_s17, 128, %s1233_s8, %s555_s6   ;;  %v774_v33 = vpop.f32.mrf.mxu1 }
 0x207 PF: > { %s580_s15 = sand.u32 1, %s1022_s18   ;;  %p1302_p9 = scmp.ne.s32.totalorder %s1294_s29, 0 }
 0x208   : > { %p1303_p11 = scmp.ge.s32.totalorder %s1042_s23, 2  ;;  %s581_s16 = scalar_lea.sflag [#allocation5], %s580_s15 }
 0x20a   : > { %p799_p2 = pnand %p1303_p11, %p1302_p9 }
 0x20c   : > { %p800_p13 = pneg %p799_p2 }
 0x20e   : > { %1017 = dma.done.wait (%p800_p13), %s581_s16, 128  }
 0x20f   : > { %1019 = vsyncadd (%p800_p13), %s581_s16, 4294967168  ;;  %s22_s23 = sadd.s32 1, %s1042_s23   ;;  %s1304_s18 = smov %s1026_s19 }
 0x210   : > { %p19_p0 = scmp.ge.s32.totalorder %s22_s23, 4   ;;  %s1305_s19 = smov %s1030_s20 }
 0x211   : > { %s1306_s20 = smov %s1186_s12  ;;  %s1307_s21 = smov %s1038_s22 }
 0x212   : > { %s1308_s22 = smov %s1310_s25  ;;  %21 = sbr.rel (!%p19_p0) target bundleno = 9 (0x9), region = 106 }
 0x217   :  { %586 = vsyncpa [#allocation4], 1 }
 0x218   :  { %588 = vsyncpa [#allocation4 + $0x1], 1 }
 0x219   :  { %589 = vsyncpa [#allocation7], 1 }
 0x21a   :  { %590 = vsyncpa [#allocation5], 1 }
 0x21b   :  { %592 = vsyncpa [#allocation5 + $0x1], 1 }

</bundles_post_ra>
